<compile_context>
chip_gen: v7x
topology: tpu7x:2x2x1
jax: 0.10.0
libtpu: 0.0.40
codegen_flags: <defaults>
</compile_context>

<pallas_src>
import functools

import jax
import jax.numpy as jnp
from jax.experimental import pallas as pl
from jax.experimental.pallas import tpu as pltpu


HIDDEN = 200        # logical hidden width (nn.Linear(., 200))
HIDDEN_PAD = 256    # zero-padded to a multiple of 128 for clean MXU/lane tiles


def _round_up(n, m):
    return ((n + m - 1) // m) * m


def tarnet_kernel(x_ref, w1_ref, b1_ref, w2_ref, b2_ref, wh_ref, bh_ref, o_ref):
    # Layer 1: (TB, Dp) @ (Dp, H) -- bf16 operands, f32 accumulation, f32 bias/ReLU.
    h = jnp.dot(x_ref[...], w1_ref[...], preferred_element_type=jnp.float32)
    h = jnp.maximum(h + b1_ref[...], 0.0)

    # Layer 2: (TB, H) @ (H, H)
    h = jnp.dot(h.astype(w2_ref.dtype), w2_ref[...],
                preferred_element_type=jnp.float32)
    h = jnp.maximum(h + b2_ref[...], 0.0)

    # Fused heads: (TB, H) @ (H, 2) -> column 0 is t0, column 1 is t1.
    o_ref[...] = (jnp.dot(h.astype(wh_ref.dtype), wh_ref[...],
                          preferred_element_type=jnp.float32)
                  + bh_ref[...])


@functools.partial(jax.jit, static_argnames=("block_b",))
def tarnet_forward(x, params, *, block_b=1024):
    """x: [B, D] f32.  params: weights stored [in, out], biases [1, out] (f32)."""
    w1, b1, w2, b2, w_t0, b_t0, w_t1, b_t1 = params
    B, D = x.shape
    H = HIDDEN_PAD
    Dp = _round_up(D, 16)            # bf16 sublane packing friendly

    # Batch tile: multiple of 8 sublanes, capped so tiny batches stay tiny.
    TB = min(block_b, _round_up(B, 8))
    Bp = _round_up(B, TB)

    bf16 = jnp.bfloat16
    # Zero-pad hidden 200 -> 256 and input D -> Dp; fuse the two 200->1 heads
    # into one [H, 2] weight / [1, 2] bias (exact: zero padding contributes 0).
    w1p = jnp.zeros((Dp, H), bf16).at[:D, :HIDDEN].set(w1.astype(bf16))
    b1p = jnp.zeros((1, H), jnp.float32).at[:, :HIDDEN].set(b1)
    w2p = jnp.zeros((H, H), bf16).at[:HIDDEN, :HIDDEN].set(w2.astype(bf16))
    b2p = jnp.zeros((1, H), jnp.float32).at[:, :HIDDEN].set(b2)
    wh = jnp.zeros((H, 2), bf16).at[:HIDDEN, :].set(
        jnp.concatenate([w_t0, w_t1], axis=1).astype(bf16))
    bh = jnp.concatenate([b_t0, b_t1], axis=1).astype(jnp.float32)

    # Pad batch to a multiple of the tile; padded rows are sliced off below.
    xp = jnp.zeros((Bp, Dp), bf16).at[:B, :D].set(x.astype(bf16))

    grid = (Bp // TB,)
    cost = pl.CostEstimate(
        flops=2 * Bp * (Dp * H + H * H + H * 2),
        transcendentals=0,
        bytes_accessed=(xp.size * 2 + w1p.size * 2 + w2p.size * 2 + wh.size * 2
                        + b1p.size * 4 + b2p.size * 4 + bh.size * 4
                        + Bp * 2 * 4),
    )

    out = pl.pallas_call(
        tarnet_kernel,
        out_shape=jax.ShapeDtypeStruct((Bp, 2), jnp.float32),
        grid=grid,
        in_specs=[
            pl.BlockSpec((TB, Dp), lambda i: (i, 0)),  # x: tiled over batch
            pl.BlockSpec((Dp, H), lambda i: (0, 0)),   # W1: VMEM-resident
            pl.BlockSpec((1, H), lambda i: (0, 0)),    # b1
            pl.BlockSpec((H, H), lambda i: (0, 0)),    # W2
            pl.BlockSpec((1, H), lambda i: (0, 0)),    # b2
            pl.BlockSpec((H, 2), lambda i: (0, 0)),    # fused head weights
            pl.BlockSpec((1, 2), lambda i: (0, 0)),    # fused head bias
        ],
        out_specs=pl.BlockSpec((TB, 2), lambda i: (i, 0)),
        compiler_params=pltpu.CompilerParams(
            dimension_semantics=("parallel",)),        # megacore sharding on v7x
        cost_estimate=cost,
    )(xp, w1p, b1p, w2p, b2p, wh, bh)

    y = out[:B]
    return y[:, 0:1], y[:, 1:2]


def init_params(key, input_dim, hidden=HIDDEN):
    """Deterministic PyTorch-nn.Linear-style init (uniform +-1/sqrt(fan_in)).

    Weights are kept as [in, out] so the kernel does x @ W."""
    ks = jax.random.split(key, 8)

    def lin(kw, kb, fan_in, fan_out):
        bound = 1.0 / jnp.sqrt(float(fan_in))
        w = jax.random.uniform(kw, (fan_in, fan_out), jnp.float32, -bound, bound)
        b = jax.random.uniform(kb, (1, fan_out), jnp.float32, -bound, bound)
        return w, b

    w1, b1 = lin(ks[0], ks[1], input_dim, hidden)
    w2, b2 = lin(ks[2], ks[3], hidden, hidden)
    w_t0, b_t0 = lin(ks[4], ks[5], hidden, 1)
    w_t1, b_t1 = lin(ks[6], ks[7], hidden, 1)
    return (w1, b1, w2, b2, w_t0, b_t0, w_t1, b_t1)


def tarnet_ref_f32(x, params):
    """Exact (f32) reference of the PyTorch module."""
    w1, b1, w2, b2, w_t0, b_t0, w_t1, b_t1 = params
    h = jnp.maximum(x @ w1 + b1, 0.0)
    h = jnp.maximum(h @ w2 + b2, 0.0)
    return h @ w_t0 + b_t0, h @ w_t1 + b_t1


def tarnet_ref_bf16(x, params):
    """Reference with the same bf16 operand casts / f32 accumulation as the kernel."""
    w1, b1, w2, b2, w_t0, b_t0, w_t1, b_t1 = params
    bf = jnp.bfloat16
    h = jnp.dot(x.astype(bf), w1.astype(bf), preferred_element_type=jnp.float32) + b1
    h = jnp.maximum(h, 0.0)
    h = jnp.dot(h.astype(bf), w2.astype(bf), preferred_element_type=jnp.float32) + b2
    h = jnp.maximum(h, 0.0)
    y0 = jnp.dot(h.astype(bf), w_t0.astype(bf), preferred_element_type=jnp.float32) + b_t0
    y1 = jnp.dot(h.astype(bf), w_t1.astype(bf), preferred_element_type=jnp.float32) + b_t1
    return y0, y1


if __name__ == "__main__":
    key = jax.random.PRNGKey(0)
    k_x, k_p = jax.random.split(key)

    B, input_dim = 8, 32
    x = jax.random.normal(k_x, (B, input_dim), jnp.float32)
    params = init_params(k_p, input_dim)

    y0, y1 = tarnet_forward(x, params)
    jax.block_until_ready((y0, y1))
    assert y0.shape == (B, 1) and y1.shape == (B, 1)

    # Tight check vs. a reference using the same bf16 operand casts.
    q0, q1 = tarnet_ref_bf16(x, params)
    assert jnp.allclose(y0, q0, atol=1e-2, rtol=1e-2)
    assert jnp.allclose(y1, q1, atol=1e-2, rtol=1e-2)

    # Loose check vs. the exact f32 module semantics (bf16 operand rounding only).
    r0, r1 = tarnet_ref_f32(x, params)
    assert jnp.allclose(y0, r0, atol=5e-2, rtol=5e-2)
    assert jnp.allclose(y1, r1, atol=5e-2, rtol=5e-2)

    print("KERNEL_OK")
</pallas_src>

<mosaic_0001>
module attributes {stable_mosaic.version = 11 : i64} {
  func.func @tarnet_kernel(%arg0: i32, %arg1: memref<8x32xbf16, #tpu.memory_space<vmem>>, %arg2: memref<32x256xbf16, #tpu.memory_space<vmem>>, %arg3: memref<1x256xf32, #tpu.memory_space<vmem>>, %arg4: memref<256x256xbf16, #tpu.memory_space<vmem>>, %arg5: memref<1x256xf32, #tpu.memory_space<vmem>>, %arg6: memref<256x2xbf16, #tpu.memory_space<vmem>>, %arg7: memref<1x2xf32, #tpu.memory_space<vmem>>, %arg8: memref<8x2xf32, #tpu.memory_space<vmem>>) attributes {dimension_semantics = [#tpu.dimension_semantics<parallel>], iteration_bounds = array<i64: 1>, scalar_prefetch = 0 : i64, scratch_operands = 0 : i64, tpu.core_type = #tpu.core_type<tc>, window_params = [{transform_indices = @transform_0, window_bounds = array<i64: 8, 32>}, {pipeline_mode = #tpu.pipeline_mode<synchronous>, transform_indices = @transform_1, window_bounds = array<i64: 32, 256>}, {pipeline_mode = #tpu.pipeline_mode<synchronous>, transform_indices = @transform_2, window_bounds = array<i64: 1, 256>}, {pipeline_mode = #tpu.pipeline_mode<synchronous>, transform_indices = @transform_3, window_bounds = array<i64: 256, 256>}, {pipeline_mode = #tpu.pipeline_mode<synchronous>, transform_indices = @transform_4, window_bounds = array<i64: 1, 256>}, {pipeline_mode = #tpu.pipeline_mode<synchronous>, transform_indices = @transform_5, window_bounds = array<i64: 256, 2>}, {pipeline_mode = #tpu.pipeline_mode<synchronous>, transform_indices = @transform_6, window_bounds = array<i64: 1, 2>}, {transform_indices = @transform_7, window_bounds = array<i64: 8, 2>}]} {
    %c0 = arith.constant 0 : index
    %c0_0 = arith.constant 0 : index
    %0 = vector.load %arg1[%c0, %c0_0] : memref<8x32xbf16, #tpu.memory_space<vmem>>, vector<8x32xbf16>
    %c0_1 = arith.constant 0 : index
    %c0_2 = arith.constant 0 : index
    %1 = vector.load %arg2[%c0_1, %c0_2] : memref<32x256xbf16, #tpu.memory_space<vmem>>, vector<32x256xbf16>
    %cst = arith.constant dense<0.000000e+00> : vector<8x256xf32>
    %2 = tpu.matmul %0, %1, %cst {dimension_numbers = #tpu.dot_dimension_numbers<[1], [0], [0], [1], [0, 0, 1, 1], [], []>} : vector<8x32xbf16>, vector<32x256xbf16>, vector<8x256xf32> -> vector<8x256xf32>
    %c0_3 = arith.constant 0 : index
    %c0_4 = arith.constant 0 : index
    %3 = vector.load %arg3[%c0_3, %c0_4] : memref<1x256xf32, #tpu.memory_space<vmem>>, vector<1x256xf32>
    %4 = vector.broadcast %3 : vector<1x256xf32> to vector<8x256xf32>
    %5 = arith.addf %2, %4 : vector<8x256xf32>
    %cst_5 = arith.constant 0.000000e+00 : f32
    %6 = vector.broadcast %cst_5 : f32 to vector<8x256xf32>
    %7 = arith.maximumf %5, %6 : vector<8x256xf32>
    %8 = arith.truncf %7 : vector<8x256xf32> to vector<8x256xbf16>
    %c0_6 = arith.constant 0 : index
    %c0_7 = arith.constant 0 : index
    %9 = vector.load %arg4[%c0_6, %c0_7] : memref<256x256xbf16, #tpu.memory_space<vmem>>, vector<256x256xbf16>
    %cst_8 = arith.constant dense<0.000000e+00> : vector<8x256xf32>
    %10 = tpu.matmul %8, %9, %cst_8 {dimension_numbers = #tpu.dot_dimension_numbers<[1], [0], [0], [1], [0, 0, 1, 1], [], []>} : vector<8x256xbf16>, vector<256x256xbf16>, vector<8x256xf32> -> vector<8x256xf32>
    %c0_9 = arith.constant 0 : index
    %c0_10 = arith.constant 0 : index
    %11 = vector.load %arg5[%c0_9, %c0_10] : memref<1x256xf32, #tpu.memory_space<vmem>>, vector<1x256xf32>
    %12 = vector.broadcast %11 : vector<1x256xf32> to vector<8x256xf32>
    %13 = arith.addf %10, %12 : vector<8x256xf32>
    %cst_11 = arith.constant 0.000000e+00 : f32
    %14 = vector.broadcast %cst_11 : f32 to vector<8x256xf32>
    %15 = arith.maximumf %13, %14 : vector<8x256xf32>
    %16 = arith.truncf %15 : vector<8x256xf32> to vector<8x256xbf16>
    %c0_12 = arith.constant 0 : index
    %c0_13 = arith.constant 0 : index
    %17 = vector.load %arg6[%c0_12, %c0_13] : memref<256x2xbf16, #tpu.memory_space<vmem>>, vector<256x2xbf16>
    %cst_14 = arith.constant dense<0.000000e+00> : vector<8x2xf32>
    %18 = tpu.matmul %16, %17, %cst_14 {dimension_numbers = #tpu.dot_dimension_numbers<[1], [0], [0], [1], [0, 0, 1, 1], [], []>} : vector<8x256xbf16>, vector<256x2xbf16>, vector<8x2xf32> -> vector<8x2xf32>
    %c0_15 = arith.constant 0 : index
    %c0_16 = arith.constant 0 : index
    %19 = vector.load %arg7[%c0_15, %c0_16] : memref<1x2xf32, #tpu.memory_space<vmem>>, vector<1x2xf32>
    %20 = vector.broadcast %19 : vector<1x2xf32> to vector<8x2xf32>
    %21 = arith.addf %18, %20 : vector<8x2xf32>
    %c0_17 = arith.constant 0 : index
    %c0_18 = arith.constant 0 : index
    %22 = vector.load %arg8[%c0_17, %c0_18] : memref<8x2xf32, #tpu.memory_space<vmem>>, vector<8x2xf32>
    tpu.vector_store %arg8[%c0_17, %c0_18], %21 {strides = array<i32>} : memref<8x2xf32, #tpu.memory_space<vmem>>, vector<8x2xf32>,
    return
  }
  func.func @transform_0(%arg0: i32) -> (i32, i32) {
    %c0_i32 = arith.constant 0 : i32
    %c0_i32_0 = arith.constant 0 : i32
    return %arg0, %c0_i32 : i32, i32
  }
  func.func @transform_1(%arg0: i32) -> (i32, i32) {
    %c0_i32 = arith.constant 0 : i32
    %c0_i32_0 = arith.constant 0 : i32
    %c0_i32_1 = arith.constant 0 : i32
    return %c0_i32, %c0_i32_0 : i32, i32
  }
  func.func @transform_2(%arg0: i32) -> (i32, i32) {
    %c0_i32 = arith.constant 0 : i32
    %c0_i32_0 = arith.constant 0 : i32
    %c0_i32_1 = arith.constant 0 : i32
    return %c0_i32, %c0_i32_0 : i32, i32
  }
  func.func @transform_3(%arg0: i32) -> (i32, i32) {
    %c0_i32 = arith.constant 0 : i32
    %c0_i32_0 = arith.constant 0 : i32
    %c0_i32_1 = arith.constant 0 : i32
    return %c0_i32, %c0_i32_0 : i32, i32
  }
  func.func @transform_4(%arg0: i32) -> (i32, i32) {
    %c0_i32 = arith.constant 0 : i32
    %c0_i32_0 = arith.constant 0 : i32
    %c0_i32_1 = arith.constant 0 : i32
    return %c0_i32, %c0_i32_0 : i32, i32
  }
  func.func @transform_5(%arg0: i32) -> (i32, i32) {
    %c0_i32 = arith.constant 0 : i32
    %c0_i32_0 = arith.constant 0 : i32
    %c0_i32_1 = arith.constant 0 : i32
    return %c0_i32, %c0_i32_0 : i32, i32
  }
  func.func @transform_6(%arg0: i32) -> (i32, i32) {
    %c0_i32 = arith.constant 0 : i32
    %c0_i32_0 = arith.constant 0 : i32
    %c0_i32_1 = arith.constant 0 : i32
    return %c0_i32, %c0_i32_0 : i32, i32
  }
  func.func @transform_7(%arg0: i32) -> (i32, i32) {
    %c0_i32 = arith.constant 0 : i32
    %c0_i32_0 = arith.constant 0 : i32
    return %arg0, %c0_i32 : i32, i32
  }
}

</mosaic_0001>

<bundles_post_ra>
// kernel: tarnet_forward.1
= control target key start
LH: loop header
LB: loop body
LE: loop exit
PB: predicated region body
PF: predicated region fallthrough
CT: control target
= control target key end

     0   :  { %v690_v1 = vmov 0   ;;  %vm64_vm0 = vcmask 261120   ;;  %v34_v50 = vlaneseq  ;;  %vm537_vm1 = vcmask 15360   ;;  %s902_s1 = inlined_call_operand.vmem [shape: bf16[32,256], index: 1, kind: input, shape index: {}]   ;;  %s903_s3 = inlined_call_operand.vmem [shape: bf16[256,256], index: 3, kind: input, shape index: {}]   ;;  %s904_s0 = inlined_call_operand.vmem [shape: bf16[8,32], index: 0, kind: input, shape index: {}]   ;;  %s905_s5 = inlined_call_operand.vmem [shape: bf16[256,2], index: 5, kind: input, shape index: {}]   ;;  %s906_s2 = inlined_call_operand.vmem [shape: f32[1,256], index: 2, kind: input, shape index: {}]   ;;  %s907_s4 = inlined_call_operand.vmem [shape: f32[1,256], index: 4, kind: input, shape index: {}]   ;;  %s908_s6 = inlined_call_operand.vmem [shape: f32[1,2], index: 6, kind: input, shape index: {}]   ;;  %s909_s7 = inlined_call_operand.vmem [shape: f32[8,2], index: 7, kind: output, shape index: {}]  }
   0x1   :  { %v620_v0 = vld [vmem:[%s902_s1 + $0x4] ss:$8 sps:$4 sm:$0xff]   ;;  %100 = vmatprep.mubr.bf16.mxu0 %v690_v1  ;;  %v622_v2 = vld [vmem:[%s902_s1] ss:$8 sps:$4 sm:$0xff]   ;;  %v623_v3 = vld [vmem:[%s902_s1 + $0x14] ss:$8 sps:$4 sm:$0xff]  }
   0x2   :  { %68 = vmatprep.subr.bf16.mxu0 %v620_v0  ;;  %v625_v4 = vld [vmem:[%s902_s1 + $0x10] ss:$8 sps:$4 sm:$0xff]   ;;  %v626_v5 = vld [vmem:[%s903_s3 + $0x4] ss:$8 sps:$4 sm:$0xff]   ;;  %v628_v6 = vld [vmem:[%s903_s3] ss:$8 sps:$4 sm:$0xff]  }
   0x3   :  { %69 = vmatpush1.bf16.msra.mxu0 %v622_v2  ;;  %317 = vmatprep.subr.bf16.mxu1 %v626_v5  ;;  %v629_v7 = vld [vmem:[%s903_s3 + $0x14] ss:$8 sps:$4 sm:$0xff]   ;;  %v27_v8 = vld [vmem:[%s904_s0] sm:$0xf]  ;;  %v631_v9 = vld [vmem:[%s903_s3 + $0x10] ss:$8 sps:$4 sm:$0xff]  }
   0x4   :  { %70 = vmatprep.subr.bf16.mxu0 %v623_v3  ;;  %318 = vmatpush1.bf16.msra.mxu1 %v628_v6  ;;  %v632_v10 = vld [vmem:[%s903_s3 + $0x24] ss:$8 sps:$4 sm:$0xff]   ;;  %v634_v11 = vld [vmem:[%s903_s3 + $0x20] ss:$8 sps:$4 sm:$0xff]   ;;  %v635_v12 = vld [vmem:[%s903_s3 + $0x34] ss:$8 sps:$4 sm:$0xff]  }
   0x5   :  { %319 = vmatprep.subr.bf16.mxu1 %v629_v7  ;;  %v637_v13 = vld [vmem:[%s903_s3 + $0x30] ss:$8 sps:$4 sm:$0xff]   ;;  %v638_v14 = vld [vmem:[%s903_s3 + $0x44] ss:$8 sps:$4 sm:$0xff]   ;;  %v640_v15 = vld [vmem:[%s903_s3 + $0x40] ss:$8 sps:$4 sm:$0xff]  }
   0x6   :  { %v641_v16 = vld [vmem:[%s903_s3 + $0x54] ss:$8 sps:$4 sm:$0xff]   ;;  %v643_v17 = vld [vmem:[%s903_s3 + $0x50] ss:$8 sps:$4 sm:$0xff]   ;;  %v644_v18 = vld [vmem:[%s903_s3 + $0x64] ss:$8 sps:$4 sm:$0xff]  }
   0x7   :  { %71 = vmatpush1.bf16.msra.mxu0 %v625_v4  ;;  %v646_v19 = vld [vmem:[%s903_s3 + $0x60] ss:$8 sps:$4 sm:$0xff]   ;;  %v647_v20 = vld [vmem:[%s903_s3 + $0x74] ss:$8 sps:$4 sm:$0xff]   ;;  %v649_v21 = vld [vmem:[%s903_s3 + $0x70] ss:$8 sps:$4 sm:$0xff]  }
   0x8   :  { %320 = vmatpush1.bf16.msra.mxu1 %v631_v9  ;;  %v650_v22 = vld [vmem:[%s903_s3 + $0x84] ss:$8 sps:$4 sm:$0xff]   ;;  %v652_v23 = vld [vmem:[%s903_s3 + $0x80] ss:$8 sps:$4 sm:$0xff]   ;;  %v653_v24 = vld [vmem:[%s903_s3 + $0x94] ss:$8 sps:$4 sm:$0xff]  }
   0x9   :  { %321 = vmatprep.subr.bf16.mxu1 %v632_v10  ;;  %v655_v25 = vld [vmem:[%s903_s3 + $0x90] ss:$8 sps:$4 sm:$0xff]   ;;  %v656_v26 = vld [vmem:[%s903_s3 + $0xa4] ss:$8 sps:$4 sm:$0xff]   ;;  %v658_v27 = vld [vmem:[%s903_s3 + $0xa0] ss:$8 sps:$4 sm:$0xff]  }
   0xa   :  { %547 = vmatmul.mubr.msk.bf16.vlgmr.msra.gmra.mrb[0].mxu0 %vm64_vm0, %v27_v8  ;;  %v659_v28 = vld [vmem:[%s903_s3 + $0xb4] ss:$8 sps:$4 sm:$0xff]   ;;  %v661_v29 = vld [vmem:[%s903_s3 + $0xb0] ss:$8 sps:$4 sm:$0xff]   ;;  %v662_v30 = vld [vmem:[%s903_s3 + $0xc4] ss:$8 sps:$4 sm:$0xff]  }
   0xb   :  { %v664_v31 = vld [vmem:[%s903_s3 + $0xc0] ss:$8 sps:$4 sm:$0xff]   ;;  %v665_v32 = vld [vmem:[%s903_s3 + $0xd4] ss:$8 sps:$4 sm:$0xff]   ;;  %v667_v33 = vld [vmem:[%s903_s3 + $0xd0] ss:$8 sps:$4 sm:$0xff]  }
   0xc   :  { %322 = vmatpush1.bf16.msra.mxu1 %v634_v11  ;;  %v668_v34 = vld [vmem:[%s903_s3 + $0xe4] ss:$8 sps:$4 sm:$0xff]   ;;  %v670_v35 = vld [vmem:[%s903_s3 + $0xe0] ss:$8 sps:$4 sm:$0xff]   ;;  %v671_v36 = vld [vmem:[%s903_s3 + $0xf4] ss:$8 sps:$4 sm:$0xff]  }
   0xd   :  { %323 = vmatprep.subr.bf16.mxu1 %v635_v12  ;;  %v673_v37 = vld [vmem:[%s903_s3 + $0xf0] ss:$8 sps:$4 sm:$0xff]   ;;  %v674_v38 = vld [vmem:[%s905_s5 + $0x40] sm:$0xff]   ;;  %v676_v40 = vld [vmem:[%s905_s5 + $0x48] sm:$0xff]   ;;  %v35_v51 = vshrl.u32 %v34_v50, 7 }
   0xe   :  { %v675_v39 = vld [vmem:[%s905_s5] sm:$0xff]   ;;  %597 = vmatprep.subr.bf16.mxu0 %v674_v38  ;;  %v677_v41 = vld [vmem:[%s905_s5 + $0x8] sm:$0xff]   ;;  %v678_v42 = vld [vmem:[%s905_s5 + $0x50] sm:$0xff]  }
   0xf   :  { %598 = vmatpush3.bf16.msra.mxu0 %v675_v39  ;;  %v679_v43 = vld [vmem:[%s905_s5 + $0x10] sm:$0xff]   ;;  %v680_v44 = vld [vmem:[%s905_s5 + $0x58] sm:$0xff]   ;;  %v682_v46 = vld [vmem:[%s905_s5 + $0x60] sm:$0xff]   ;;  %v36_v52 = vsub.s32 0, %v35_v51  ;;  %v40_v54 = vsub.s32 1, %v35_v51 }
  0x10   :  { %324 = vmatpush1.bf16.msra.mxu1 %v637_v13  ;;  %599 = vmatprep.subr.bf16.mxu0 %v676_v40  ;;  %v681_v45 = vld [vmem:[%s905_s5 + $0x18] sm:$0xff]   ;;  %v683_v47 = vld [vmem:[%s905_s5 + $0x20] sm:$0xff]   ;;  %v684_v48 = vld [vmem:[%s905_s5 + $0x68] sm:$0xff]  }
  0x11   :  { %325 = vmatprep.subr.bf16.mxu1 %v638_v14  ;;  %v685_v49 = vld [vmem:[%s905_s5 + $0x28] sm:$0xff]   ;;  %v32_v53 = vld [vmem:[%s906_s2] sm:$0x3]  ;;  %v686_v3 = vld [vmem:[%s905_s5 + $0x70] sm:$0xff]  }
  0x12   :  { %v37_v55 = vrot.slane %v32_v53, %v36_v52  ;;  %v41_v56 = vrot.slane %v32_v53, %v40_v54  ;;  %v687_v4 = vld [vmem:[%s905_s5 + $0x30] sm:$0xff]   ;;  %v688_v5 = vld [vmem:[%s905_s5 + $0x78] sm:$0xff]   ;;  %v145_v7 = vld [vmem:[%s907_s4] sm:$0x3] }
  0x13   :  { %600 = vmatpush3.bf16.msra.mxu0 %v677_v41  ;;  %v689_v6 = vld [vmem:[%s905_s5 + $0x38] sm:$0xff]   ;;  %v150_v8 = vrot.slane %v145_v7, %v36_v52  ;;  %v154_v9 = vrot.slane %v145_v7, %v40_v54 }
  0x14   :  { %326 = vmatpush1.bf16.msra.mxu1 %v640_v15  ;;  %601 = vmatprep.subr.bf16.mxu0 %v678_v42 }
  0x15   :  { %327 = vmatprep.subr.bf16.mxu1 %v641_v16 }
  0x17   :  { %602 = vmatpush3.bf16.msra.mxu0 %v679_v43 }
  0x18   :  { %328 = vmatpush1.bf16.msra.mxu1 %v643_v17  ;;  %603 = vmatprep.subr.bf16.mxu0 %v680_v44 }
  0x19   :  { %329 = vmatprep.subr.bf16.mxu1 %v644_v18 }
  0x1b   :  { %604 = vmatpush3.bf16.msra.mxu0 %v681_v45 }
  0x1c   :  { %330 = vmatpush1.bf16.msra.mxu1 %v646_v19  ;;  %605 = vmatprep.subr.bf16.mxu0 %v682_v46 }
  0x1d   :  { %331 = vmatprep.subr.bf16.mxu1 %v647_v20 }
  0x1f   :  { %606 = vmatpush3.bf16.msra.mxu0 %v683_v47 }
  0x20   :  { %332 = vmatpush1.bf16.msra.mxu1 %v649_v21  ;;  %607 = vmatprep.subr.bf16.mxu0 %v684_v48  ;;  %v580_v21 = vld [vmem:[%s908_s6] ss:$0 sm:$0xff] }
  0x21   :  { %333 = vmatprep.subr.bf16.mxu1 %v650_v22 }
  0x23   :  { %608 = vmatpush3.bf16.msra.mxu0 %v685_v49 }
  0x24   :  { %334 = vmatpush1.bf16.msra.mxu1 %v652_v23  ;;  %609 = vmatprep.subr.bf16.mxu0 %v686_v3 }
  0x25   :  { %335 = vmatprep.subr.bf16.mxu1 %v653_v24 }
  0x27   :  { %610 = vmatpush3.bf16.msra.mxu0 %v687_v4 }
  0x28   :  { %336 = vmatpush1.bf16.msra.mxu1 %v655_v25  ;;  %611 = vmatprep.subr.bf16.mxu0 %v688_v5 }
  0x29   :  { %337 = vmatprep.subr.bf16.mxu1 %v656_v26 }
  0x2b   :  { %612 = vmatpush3.bf16.msra.mxu0 %v689_v6 }
  0x2c   :  { %338 = vmatpush1.bf16.msra.mxu1 %v658_v27 }
  0x2d   :  { %339 = vmatprep.subr.bf16.mxu1 %v659_v28 }
  0x30   :  { %340 = vmatpush1.bf16.msra.mxu1 %v661_v29 }
  0x31   :  { %341 = vmatprep.subr.bf16.mxu1 %v662_v30 }
  0x34   :  { %342 = vmatpush1.bf16.msra.mxu1 %v664_v31 }
  0x35   :  { %343 = vmatprep.subr.bf16.mxu1 %v665_v32 }
  0x38   :  { %344 = vmatpush1.bf16.msra.mxu1 %v667_v33 }
  0x39   :  { %345 = vmatprep.subr.bf16.mxu1 %v668_v34 }
  0x3c   :  { %346 = vmatpush1.bf16.msra.mxu1 %v670_v35 }
  0x3d   :  { %347 = vmatprep.subr.bf16.mxu1 %v671_v36 }
  0x40   :  { %348 = vmatpush1.bf16.msra.mxu1 %v673_v37 }
  0xdd   :  { %v102_v57 = vpop.f32.mrb[0].mxu0 }
  0xde   :  { %v103_v58 = vadd.f32 %v102_v57, %v37_v55  ;;  %v104_v59 = vpop.f32.mrb[1].mxu0 }
  0xdf   :  { %v105_v60 = vadd.f32 %v104_v59, %v41_v56  ;;  %v106_v61 = vpop.f32.mrb[2].mxu0 }
  0xe0   :  { %v109_v62 = vmax.f32 %v103_v58, 0.0  ;;  %v107_v63 = vpop.f32.mrb[3].mxu0 }
  0xe1   :  { %v110_v0 = vmax.f32 %v105_v60, 0.0 }
  0xe2   :  { %v111_v2 = vpack.c.bf16 %v109_v62, %v109_v62 }
  0xe3   :  { %v112_v1 = vpack.c.bf16 %v110_v0, %v110_v0 }
  0xe5   :  { %349 = vmatprep.mubr.bf16.mxu1 %v112_v1 }
  0xe6   :  { %350 = vmatmul.mubr.bf16.vlgmr.msra.gmra.mrb[0].mxu1 %v111_v2 }
 0x1b9   :  { %v351_v10 = vpop.f32.mrb[0].mxu1 }
 0x1ba   :  { %v352_v11 = vadd.f32 %v351_v10, %v150_v8  ;;  %v353_v12 = vpop.f32.mrb[1].mxu1 }
 0x1bb   :  { %v354_v13 = vadd.f32 %v353_v12, %v154_v9  ;;  %v355_v14 = vpop.f32.mrb[2].mxu1 }
 0x1bc   :  { %v358_v15 = vmax.f32 %v352_v11, 0.0  ;;  %v356_v16 = vpop.f32.mrb[3].mxu1 }
 0x1bd   :  { %v359_v17 = vmax.f32 %v354_v13, 0.0 }
 0x1be   :  { %v360_v19 = vpack.c.bf16 %v358_v15, %v358_v15 }
 0x1bf   :  { %v361_v18 = vpack.c.bf16 %v359_v17, %v359_v17 }
 0x1c1   :  { %529 = vmatprep.mubr.bf16.mxu0 %v361_v18 }
 0x1c2   :  { %530 = vmatmul.mubr.bf16.vlgmr.msra.gmra.mrb[4].mxu0 %v360_v19 }
 0x295   :  { %v613_v20 = vpop.f32.mrb[4].mxu0 }
 0x296   :  { %v614_v22 = vpop.f32.mrb[5].mxu0 }
 0x297   :  { %v615_v23 = vadd.f32 %v614_v22, %v613_v20  ;;  %v616_v24 = vpop.f32.mrb[6].mxu0 }
 0x298   :  { %v617_v25 = vpop.f32.mrb[7].mxu0 }
 0x299   :  { %v532_v26 = vadd.f32 %v615_v23, %v580_v21 }
 0x29b   :  { %538 = vst.msk [vmem:[%s909_s7] sm:$0xff] %vm537_vm1, %v532_v26 }

</bundles_post_ra>
